<compile_context>
chip_gen: v5e
topology: v5e:2x2
jax: 0.10.0
libtpu: 0.0.40
codegen_flags: <defaults>
</compile_context>

<pallas_src>
import functools

import jax
import jax.numpy as jnp
from jax import lax
from jax.experimental import pallas as pl
from jax.experimental.pallas import tpu as pltpu

K_IN = 210             # model input features
K_PAD = 256            # layer-1 contraction dim, padded to a lane multiple
DEFAULT_TILE_B = 1024  # batch tile; big enough to amortize per-step overhead,
                       # small enough for v7x's 64 MiB VMEM with room to spare


def _round_up(v, m):
    return (v + m - 1) // m * m


def mlp_kernel(x_ref,
               w1_ref, b1_ref,
               w2_ref, b2_ref,
               w3_ref, b3_ref,
               w4t_ref, b4_ref,
               o_ref,
               xp_ref):
    cdt = w1_ref.dtype  # MXU input dtype (bf16 or f32); accumulation stays f32

    # Stage the f32 (TB, 210) HBM tile into the lane-aligned (TB, 256) scratch:
    # cast + zero tail.  Fully rewritten every step (megacore-safe).
    xp_ref[:, :K_IN] = x_ref[...].astype(cdt)
    xp_ref[:, K_IN:] = jnp.zeros((xp_ref.shape[0], K_PAD - K_IN), xp_ref.dtype)

    h1 = jnp.dot(xp_ref[...], w1_ref[...], preferred_element_type=jnp.float32)
    h1 = jnp.maximum(h1 + b1_ref[...], 0.0)                          # f32 (TB, 128)

    h2 = jnp.dot(h1.astype(cdt), w2_ref[...],
                 preferred_element_type=jnp.float32)
    h2 = jnp.maximum(h2 + b2_ref[...], 0.0)                          # f32 (TB, 64)

    h3 = jnp.dot(h2.astype(cdt), w3_ref[...],
                 preferred_element_type=jnp.float32)
    h3 = jnp.maximum(h3 + b3_ref[...], 0.0)                          # f32 (TB, 32)

    # Final layer in row (lane-major) form:  out[0, b] = sum_k w4t[0,k] * h3[b,k]
    # -> lane-dense (1, TB) store instead of a width-1 column.
    row = lax.dot_general(w4t_ref[...], h3.astype(cdt),
                          dimension_numbers=(((1,), (1,)), ((), ())),
                          preferred_element_type=jnp.float32)        # (1, TB)
    o_ref[...] = ((row + b4_ref[...])[None]).astype(o_ref.dtype)     # (1, 1, TB)


@functools.partial(jax.jit, static_argnames=("compute_dtype",))
def judge_forward(x, params, compute_dtype=jnp.bfloat16):
    """x: (B, 210) float32.  params: dict of (in,out) weights and (1,out) biases."""
    B, K = x.shape
    assert K == K_IN
    cdt = jnp.dtype(compute_dtype)

    tile_b = min(DEFAULT_TILE_B, _round_up(B, 8))
    num_tiles = pl.cdiv(B, tile_b)
    b_pad = num_tiles * tile_b

    # Pad the batch only if it is not already a tile multiple (rows are
    # independent, padded rows are sliced off below).
    x_in = x if b_pad == B else jnp.pad(x, ((0, b_pad - B), (0, 0)))

    # Weights are tiny: cast (and zero-pad w1's contraction dim) on the host.
    w1 = jnp.zeros((K_PAD, 128), cdt).at[:K_IN, :].set(params["w1"].astype(cdt))
    w2 = params["w2"].astype(cdt)
    w3 = params["w3"].astype(cdt)
    w4t = params["w4"].T.astype(cdt)                    # (1, 32)
    b1, b2, b3, b4 = params["b1"], params["b2"], params["b3"], params["b4"]

    def const(shape):
        return pl.BlockSpec(shape, lambda i: (0, 0))    # resident across grid steps

    flops = 2 * b_pad * (K_PAD * 128 + 128 * 64 + 64 * 32 + 32 * 1)
    bytes_accessed = (
        x_in.size * x_in.dtype.itemsize + b_pad * 4
        + sum(a.size * a.dtype.itemsize for a in (w1, b1, w2, b2, w3, b3, w4t, b4)))

    out = pl.pallas_call(
        mlp_kernel,
        out_shape=jax.ShapeDtypeStruct((num_tiles, 1, tile_b), jnp.float32),
        grid=(num_tiles,),
        in_specs=[
            pl.BlockSpec((tile_b, K_IN), lambda i: (i, 0)),  # x tile (double-buffered)
            const((K_PAD, 128)), const((1, 128)),
            const((128, 64)),    const((1, 64)),
            const((64, 32)),     const((1, 32)),
            const((1, 32)),      const((1, 1)),
        ],
        out_specs=pl.BlockSpec((1, 1, tile_b), lambda i: (i, 0, 0)),
        scratch_shapes=[pltpu.VMEM((tile_b, K_PAD), cdt)],   # lane-aligned x staging
        compiler_params=pltpu.CompilerParams(
            dimension_semantics=("parallel",)),
        cost_estimate=pl.CostEstimate(flops=flops, transcendentals=0,
                                      bytes_accessed=bytes_accessed),
    )(x_in, w1, b1, w2, b2, w3, b3, w4t, b4)

    return out.reshape(b_pad, 1)[:B]


def init_params(key):
    """Deterministic synthetic params. Weights stored (in, out); biases (1, out)."""
    dims = [K_IN, 128, 64, 32, 1]
    params = {}
    keys = jax.random.split(key, 8)
    for i, (din, dout) in enumerate(zip(dims[:-1], dims[1:]), start=1):
        scale = 1.0 / jnp.sqrt(jnp.float32(din))  # matches nn.Linear U(-1/sqrt(in), 1/sqrt(in))
        params[f"w{i}"] = jax.random.uniform(keys[2 * (i - 1)], (din, dout),
                                             minval=-scale, maxval=scale,
                                             dtype=jnp.float32)
        params[f"b{i}"] = jax.random.uniform(keys[2 * (i - 1) + 1], (1, dout),
                                             minval=-scale, maxval=scale,
                                             dtype=jnp.float32)
    return params


def reference_forward(x, params, compute_dtype=jnp.float32):
    """Pure-JAX reference with the same cast discipline as the kernel."""
    cdt = jnp.dtype(compute_dtype)
    h = x
    for i in range(1, 4):
        h = jnp.maximum(
            jnp.dot(h.astype(cdt), params[f"w{i}"].astype(cdt),
                    preferred_element_type=jnp.float32) + params[f"b{i}"],
            0.0)
    return jnp.dot(h.astype(cdt), params["w4"].astype(cdt),
                   preferred_element_type=jnp.float32) + params["b4"]


if __name__ == "__main__":
    key = jax.random.PRNGKey(0)
    pkey, xkey, xkey2 = jax.random.split(key, 3)
    params = init_params(pkey)

    # Small batch (single small tile, exercises narrow tail path).
    B = 8
    x = jax.random.normal(xkey, (B, K_IN), dtype=jnp.float32)

    # f32 compute path: exact semantics of the PyTorch module.
    out_f32 = jax.block_until_ready(judge_forward(x, params, compute_dtype=jnp.float32))
    ref_f32 = reference_forward(x, params, compute_dtype=jnp.float32)
    assert out_f32.shape == (B, 1)
    assert jnp.allclose(out_f32, ref_f32, atol=1e-4, rtol=1e-4), "f32 mismatch vs reference"

    # bf16 matmul-input path (MXU-friendly), f32 accumulation.
    out_bf16 = jax.block_until_ready(judge_forward(x, params, compute_dtype=jnp.bfloat16))
    ref_bf16 = reference_forward(x, params, compute_dtype=jnp.bfloat16)
    assert jnp.allclose(out_bf16, ref_bf16, atol=1e-3, rtol=1e-3), "bf16 mismatch vs reference"

    # Larger, non-tile-multiple batch: exercises multi-tile grid + tail padding.
    B2 = 1500
    x2 = jax.random.normal(xkey2, (B2, K_IN), dtype=jnp.float32)
    out2 = jax.block_until_ready(judge_forward(x2, params, compute_dtype=jnp.float32))
    ref2 = reference_forward(x2, params, compute_dtype=jnp.float32)
    assert out2.shape == (B2, 1)
    assert jnp.allclose(out2, ref2, atol=1e-4, rtol=1e-4), "multi-tile mismatch vs reference"

    print("KERNEL_OK")
</pallas_src>

<mosaic_0001>
module attributes {stable_mosaic.version = 11 : i64} {
  func.func @mlp_kernel(%arg0: i32, %arg1: memref<8x210xf32, #tpu.memory_space<vmem>>, %arg2: memref<256x128xf32, #tpu.memory_space<vmem>>, %arg3: memref<1x128xf32, #tpu.memory_space<vmem>>, %arg4: memref<128x64xf32, #tpu.memory_space<vmem>>, %arg5: memref<1x64xf32, #tpu.memory_space<vmem>>, %arg6: memref<64x32xf32, #tpu.memory_space<vmem>>, %arg7: memref<1x32xf32, #tpu.memory_space<vmem>>, %arg8: memref<1x32xf32, #tpu.memory_space<vmem>>, %arg9: memref<1x1xf32, #tpu.memory_space<vmem>>, %arg10: memref<1x1x8xf32, #tpu.memory_space<vmem>>, %arg11: memref<8x256xf32, #tpu.memory_space<vmem>>) attributes {dimension_semantics = [#tpu.dimension_semantics<parallel>], iteration_bounds = array<i64: 1>, scalar_prefetch = 0 : i64, scratch_operands = 1 : i64, tpu.core_type = #tpu.core_type<tc>, window_params = [{transform_indices = @transform_0, window_bounds = array<i64: 8, 210>}, {pipeline_mode = #tpu.pipeline_mode<synchronous>, transform_indices = @transform_1, window_bounds = array<i64: 256, 128>}, {pipeline_mode = #tpu.pipeline_mode<synchronous>, transform_indices = @transform_2, window_bounds = array<i64: 1, 128>}, {pipeline_mode = #tpu.pipeline_mode<synchronous>, transform_indices = @transform_3, window_bounds = array<i64: 128, 64>}, {pipeline_mode = #tpu.pipeline_mode<synchronous>, transform_indices = @transform_4, window_bounds = array<i64: 1, 64>}, {pipeline_mode = #tpu.pipeline_mode<synchronous>, transform_indices = @transform_5, window_bounds = array<i64: 64, 32>}, {pipeline_mode = #tpu.pipeline_mode<synchronous>, transform_indices = @transform_6, window_bounds = array<i64: 1, 32>}, {pipeline_mode = #tpu.pipeline_mode<synchronous>, transform_indices = @transform_7, window_bounds = array<i64: 1, 32>}, {pipeline_mode = #tpu.pipeline_mode<synchronous>, transform_indices = @transform_8, window_bounds = array<i64: 1, 1>}, {transform_indices = @transform_9, window_bounds = array<i64: 1, 1, 8>}]} {
    %c0 = arith.constant 0 : index
    %c0_0 = arith.constant 0 : index
    %0 = vector.load %arg1[%c0, %c0_0] : memref<8x210xf32, #tpu.memory_space<vmem>>, vector<8x210xf32>
    %c0_1 = arith.constant 0 : index
    %c0_2 = arith.constant 0 : index
    %1 = vector.load %arg11[%c0_1, %c0_2] : memref<8x256xf32, #tpu.memory_space<vmem>>, vector<8x210xf32>
    tpu.vector_store %arg11[%c0_1, %c0_2], %0 {strides = array<i32>} : memref<8x256xf32, #tpu.memory_space<vmem>>, vector<8x210xf32>,
    %cst = arith.constant 0.000000e+00 : f32
    %2 = vector.broadcast %cst : f32 to vector<8x46xf32>
    %c0_3 = arith.constant 0 : index
    %c210 = arith.constant 210 : index
    %3 = vector.load %arg11[%c0_3, %c210] : memref<8x256xf32, #tpu.memory_space<vmem>>, vector<8x46xf32>
    tpu.vector_store %arg11[%c0_3, %c210], %2 {strides = array<i32>} : memref<8x256xf32, #tpu.memory_space<vmem>>, vector<8x46xf32>,
    %c0_4 = arith.constant 0 : index
    %c0_5 = arith.constant 0 : index
    %4 = vector.load %arg11[%c0_4, %c0_5] : memref<8x256xf32, #tpu.memory_space<vmem>>, vector<8x256xf32>
    %c0_6 = arith.constant 0 : index
    %c0_7 = arith.constant 0 : index
    %5 = vector.load %arg2[%c0_6, %c0_7] : memref<256x128xf32, #tpu.memory_space<vmem>>, vector<256x128xf32>
    %cst_8 = arith.constant dense<0.000000e+00> : vector<8x128xf32>
    %6 = tpu.matmul %4, %5, %cst_8 {dimension_numbers = #tpu.dot_dimension_numbers<[1], [0], [0], [1], [0, 0, 1, 1], [], []>} : vector<8x256xf32>, vector<256x128xf32>, vector<8x128xf32> -> vector<8x128xf32>
    %c0_9 = arith.constant 0 : index
    %c0_10 = arith.constant 0 : index
    %7 = vector.load %arg3[%c0_9, %c0_10] : memref<1x128xf32, #tpu.memory_space<vmem>>, vector<1x128xf32>
    %8 = vector.broadcast %7 : vector<1x128xf32> to vector<8x128xf32>
    %9 = arith.addf %6, %8 : vector<8x128xf32>
    %cst_11 = arith.constant 0.000000e+00 : f32
    %10 = vector.broadcast %cst_11 : f32 to vector<8x128xf32>
    %11 = arith.maximumf %9, %10 : vector<8x128xf32>
    %c0_12 = arith.constant 0 : index
    %c0_13 = arith.constant 0 : index
    %12 = vector.load %arg4[%c0_12, %c0_13] : memref<128x64xf32, #tpu.memory_space<vmem>>, vector<128x64xf32>
    %cst_14 = arith.constant dense<0.000000e+00> : vector<8x64xf32>
    %13 = tpu.matmul %11, %12, %cst_14 {dimension_numbers = #tpu.dot_dimension_numbers<[1], [0], [0], [1], [0, 0, 1, 1], [], []>} : vector<8x128xf32>, vector<128x64xf32>, vector<8x64xf32> -> vector<8x64xf32>
    %c0_15 = arith.constant 0 : index
    %c0_16 = arith.constant 0 : index
    %14 = vector.load %arg5[%c0_15, %c0_16] : memref<1x64xf32, #tpu.memory_space<vmem>>, vector<1x64xf32>
    %15 = vector.broadcast %14 : vector<1x64xf32> to vector<8x64xf32>
    %16 = arith.addf %13, %15 : vector<8x64xf32>
    %cst_17 = arith.constant 0.000000e+00 : f32
    %17 = vector.broadcast %cst_17 : f32 to vector<8x64xf32>
    %18 = arith.maximumf %16, %17 : vector<8x64xf32>
    %c0_18 = arith.constant 0 : index
    %c0_19 = arith.constant 0 : index
    %19 = vector.load %arg6[%c0_18, %c0_19] : memref<64x32xf32, #tpu.memory_space<vmem>>, vector<64x32xf32>
    %cst_20 = arith.constant dense<0.000000e+00> : vector<8x32xf32>
    %20 = tpu.matmul %18, %19, %cst_20 {dimension_numbers = #tpu.dot_dimension_numbers<[1], [0], [0], [1], [0, 0, 1, 1], [], []>} : vector<8x64xf32>, vector<64x32xf32>, vector<8x32xf32> -> vector<8x32xf32>
    %c0_21 = arith.constant 0 : index
    %c0_22 = arith.constant 0 : index
    %21 = vector.load %arg7[%c0_21, %c0_22] : memref<1x32xf32, #tpu.memory_space<vmem>>, vector<1x32xf32>
    %22 = vector.broadcast %21 : vector<1x32xf32> to vector<8x32xf32>
    %23 = arith.addf %20, %22 : vector<8x32xf32>
    %cst_23 = arith.constant 0.000000e+00 : f32
    %24 = vector.broadcast %cst_23 : f32 to vector<8x32xf32>
    %25 = arith.maximumf %23, %24 : vector<8x32xf32>
    %c0_24 = arith.constant 0 : index
    %c0_25 = arith.constant 0 : index
    %26 = vector.load %arg8[%c0_24, %c0_25] : memref<1x32xf32, #tpu.memory_space<vmem>>, vector<1x32xf32>
    %cst_26 = arith.constant dense<0.000000e+00> : vector<1x8xf32>
    %27 = tpu.matmul %26, %25, %cst_26 {dimension_numbers = #tpu.dot_dimension_numbers<[1], [1], [0], [0], [0, 0, 1, 0], [], []>} : vector<1x32xf32>, vector<8x32xf32>, vector<1x8xf32> -> vector<1x8xf32>
    %c0_27 = arith.constant 0 : index
    %c0_28 = arith.constant 0 : index
    %28 = vector.load %arg9[%c0_27, %c0_28] : memref<1x1xf32, #tpu.memory_space<vmem>>, vector<1x1xf32>
    %29 = vector.broadcast %28 : vector<1x1xf32> to vector<1x8xf32>
    %30 = arith.addf %27, %29 : vector<1x8xf32>
    %31 = vector.shape_cast %30 : vector<1x8xf32> to vector<1x1x8xf32>
    %c0_29 = arith.constant 0 : index
    %c0_30 = arith.constant 0 : index
    %c0_31 = arith.constant 0 : index
    %32 = vector.load %arg10[%c0_29, %c0_30, %c0_31] : memref<1x1x8xf32, #tpu.memory_space<vmem>>, vector<1x1x8xf32>
    tpu.vector_store %arg10[%c0_29, %c0_30, %c0_31], %31 {strides = array<i32>} : memref<1x1x8xf32, #tpu.memory_space<vmem>>, vector<1x1x8xf32>,
    return
  }
  func.func @transform_0(%arg0: i32) -> (i32, i32) {
    %c0_i32 = arith.constant 0 : i32
    %c0_i32_0 = arith.constant 0 : i32
    return %arg0, %c0_i32 : i32, i32
  }
  func.func @transform_1(%arg0: i32) -> (i32, i32) {
    %c0_i32 = arith.constant 0 : i32
    %c0_i32_0 = arith.constant 0 : i32
    %c0_i32_1 = arith.constant 0 : i32
    return %c0_i32, %c0_i32_0 : i32, i32
  }
  func.func @transform_2(%arg0: i32) -> (i32, i32) {
    %c0_i32 = arith.constant 0 : i32
    %c0_i32_0 = arith.constant 0 : i32
    %c0_i32_1 = arith.constant 0 : i32
    return %c0_i32, %c0_i32_0 : i32, i32
  }
  func.func @transform_3(%arg0: i32) -> (i32, i32) {
    %c0_i32 = arith.constant 0 : i32
    %c0_i32_0 = arith.constant 0 : i32
    %c0_i32_1 = arith.constant 0 : i32
    return %c0_i32, %c0_i32_0 : i32, i32
  }
  func.func @transform_4(%arg0: i32) -> (i32, i32) {
    %c0_i32 = arith.constant 0 : i32
    %c0_i32_0 = arith.constant 0 : i32
    %c0_i32_1 = arith.constant 0 : i32
    return %c0_i32, %c0_i32_0 : i32, i32
  }
  func.func @transform_5(%arg0: i32) -> (i32, i32) {
    %c0_i32 = arith.constant 0 : i32
    %c0_i32_0 = arith.constant 0 : i32
    %c0_i32_1 = arith.constant 0 : i32
    return %c0_i32, %c0_i32_0 : i32, i32
  }
  func.func @transform_6(%arg0: i32) -> (i32, i32) {
    %c0_i32 = arith.constant 0 : i32
    %c0_i32_0 = arith.constant 0 : i32
    %c0_i32_1 = arith.constant 0 : i32
    return %c0_i32, %c0_i32_0 : i32, i32
  }
  func.func @transform_7(%arg0: i32) -> (i32, i32) {
    %c0_i32 = arith.constant 0 : i32
    %c0_i32_0 = arith.constant 0 : i32
    %c0_i32_1 = arith.constant 0 : i32
    return %c0_i32, %c0_i32_0 : i32, i32
  }
  func.func @transform_8(%arg0: i32) -> (i32, i32) {
    %c0_i32 = arith.constant 0 : i32
    %c0_i32_0 = arith.constant 0 : i32
    %c0_i32_1 = arith.constant 0 : i32
    return %c0_i32, %c0_i32_0 : i32, i32
  }
  func.func @transform_9(%arg0: i32) -> (i32, i32, i32) {
    %c0_i32 = arith.constant 0 : i32
    %c0_i32_0 = arith.constant 0 : i32
    %c0_i32_1 = arith.constant 0 : i32
    return %arg0, %c0_i32, %c0_i32_0 : i32, i32, i32
  }
}

</mosaic_0001>

<bundles_post_ra>
// kernel: judge_forward.1
= control target key start
LH: loop header
LB: loop body
LE: loop exit
PB: predicated region body
PF: predicated region fallthrough
CT: control target
= control target key end

     0   :  { %s536_s0 = inlined_call_operand.vmem [shape: f32[8,210], index: 0, kind: input, shape index: {}]   ;;  %s537_s1 = inlined_call_operand.vmem [shape: f32[256,128], index: 1, kind: input, shape index: {}]   ;;  %s538_s2 = inlined_call_operand.vmem [shape: f32[1,128], index: 2, kind: input, shape index: {}]   ;;  %s539_s3 = inlined_call_operand.vmem [shape: f32[128,64], index: 3, kind: input, shape index: {}]   ;;  %s540_s4 = inlined_call_operand.vmem [shape: f32[1,64], index: 4, kind: input, shape index: {}]   ;;  %s541_s5 = inlined_call_operand.vmem [shape: f32[64,32], index: 5, kind: input, shape index: {}]   ;;  %s542_s6 = inlined_call_operand.vmem [shape: f32[1,32], index: 6, kind: input, shape index: {}]   ;;  %s543_s7 = inlined_call_operand.vmem [shape: f32[1,32], index: 7, kind: input, shape index: {}]   ;;  %s544_s8 = inlined_call_operand.<no memory space> [shape: f32[1,1], index: 8, kind: input, shape index: {}]   ;;  %s545_s9 = inlined_call_operand.hbm [shape: f32[1,1,8], index: 9, kind: output, shape index: {}]  }
   0x1   :  { %v14_v0 = vstv %s544_s8 }
   0x2   :  { %15 = vst [vmem:[#allocation3] sm:$0x1] %v14_v0 }
   0x3   :  { %v59_v1 = vld [vmem:[%s537_s1 + $0x78] sm:$0xff]  ;;  %v58_v2 = vld [vmem:[%s537_s1 + $0x70] sm:$0xff]  ;;  %v57_v5 = vld [vmem:[%s537_s1 + $0x68] sm:$0xff]  ;;  %vm38_vm0 = vcmask 670720   ;;  %vm40_vm1 = vcmask 1048208   ;;  %v288_v21 = vmov 0.0  }
   0x4   :  { %v75_v3 = vld [vmem:[%s537_s1 + $0xf8] sm:$0xff]  ;;  %80 = vmatpush.msra.mxu0 %v59_v1  ;;  %v74_v4 = vld [vmem:[%s537_s1 + $0xf0] sm:$0xff]  ;;  %v73_v6 = vld [vmem:[%s537_s1 + $0xe8] sm:$0xff] }
   0x5   :  { %100 = vmatpush.msra.mxu1 %v75_v3  ;;  %v56_v7 = vld [vmem:[%s537_s1 + $0x60] sm:$0xff]  ;;  %v55_v9 = vld [vmem:[%s537_s1 + $0x58] sm:$0xff]  ;;  %v54_v11 = vld [vmem:[%s537_s1 + $0x50] sm:$0xff] }
   0x6   :  { %81 = vmatpush.msra.mxu0 %v58_v2  ;;  %v72_v8 = vld [vmem:[%s537_s1 + $0xe0] sm:$0xff]  ;;  %v71_v10 = vld [vmem:[%s537_s1 + $0xd8] sm:$0xff]  ;;  %v70_v12 = vld [vmem:[%s537_s1 + $0xd0] sm:$0xff] }
   0x7   :  { %101 = vmatpush.msra.mxu1 %v74_v4  ;;  %v53_v13 = vld [vmem:[%s537_s1 + $0x48] sm:$0xff]  ;;  %v389_v15 = vld [vmem:[%s536_s0] sm:$0xff]  ;;  %v136_v17 = vld [vmem:[%s539_s3 + $0x78] sm:$0xff] }
   0x8   :  { %82 = vmatpush.msra.mxu0 %v57_v5  ;;  %v69_v14 = vld [vmem:[%s537_s1 + $0xc8] sm:$0xff]  ;;  %v135_v18 = vld [vmem:[%s539_s3 + $0x70] sm:$0xff]  ;;  %v52_v19 = vld [vmem:[%s537_s1 + $0x40] sm:$0xff]  ;;  %141 = vmatpush.msra.mxu2 %v136_v17 }
   0x9   :  { %102 = vmatpush.msra.mxu1 %v73_v6  ;;  %v36_v16 = vld [vmem:[%s536_s0 + $0x8] sm:$0xff]  ;;  %v68_v20 = vld [vmem:[%s537_s1 + $0xc0] sm:$0xff]  ;;  %v51_v23 = vld [vmem:[%s537_s1 + $0x38] sm:$0xff] }
   0xa   :  { %83 = vmatpush.msra.mxu0 %v56_v7  ;;  %39 = vst.msk [vmem:[#allocation2 + $0x8] sm:$0xff] %vm38_vm0, %v36_v16  ;;  %v134_v22 = vld [vmem:[%s539_s3 + $0x68] sm:$0xff]  ;;  %v50_v24 = vld [vmem:[%s537_s1 + $0x30] sm:$0xff]  ;;  %v67_v25 = vld [vmem:[%s537_s1 + $0xb8] sm:$0xff]  ;;  %142 = vmatpush.msra.mxu2 %v135_v18 }
   0xb   :  { %103 = vmatpush.msra.mxu1 %v72_v8  ;;  %41 = vst.msk [vmem:[#allocation2 + $0x8] sm:$0xff] %vm40_vm1, %v288_v21  ;;  %v66_v26 = vld [vmem:[%s537_s1 + $0xb0] sm:$0xff]  ;;  %v133_v27 = vld [vmem:[%s539_s3 + $0x60] sm:$0xff] }
   0xc   :  { %84 = vmatpush.msra.mxu0 %v55_v9  ;;  %143 = vmatpush.msra.mxu2 %v134_v22 }
   0xd   :  { %104 = vmatpush.msra.mxu1 %v71_v10 }
   0xe   :  { %85 = vmatpush.msra.mxu0 %v54_v11 }
   0xf   :  { %105 = vmatpush.msra.mxu1 %v70_v12 }
  0x10   :  { %86 = vmatpush.msra.mxu0 %v53_v13 }
  0x11   :  { %106 = vmatpush.msra.mxu1 %v69_v14 }
  0x12   :  { %87 = vmatpush.msra.mxu0 %v52_v19 }
  0x13   :  { %107 = vmatpush.msra.mxu1 %v68_v20 }
  0x14   :  { %16 = vsyncpa [#allocation5], 0  ;;  %88 = vmatpush.msra.mxu0 %v51_v23  ;;  %v132_v28 = vld [vmem:[%s539_s3 + $0x58] sm:$0xff]  ;;  %v49_v29 = vld [vmem:[%s537_s1 + $0x28] sm:$0xff]  ;;  %144 = vmatpush.msra.mxu2 %v133_v27  ;;  %vm174_vm2 = vcmask 523264   ;;  %v289_v8 = vmov 0  }
  0x15   :  { %108 = vmatpush.msra.mxu1 %v67_v25  ;;  %v65_v30 = vld [vmem:[%s537_s1 + $0xa8] sm:$0xff]  ;;  %v131_v31 = vld [vmem:[%s539_s3 + $0x50] sm:$0xff]  ;;  %v48_v32 = vld [vmem:[%s537_s1 + $0x20] sm:$0xff]  ;;  %258 = vset.pattern.permute.xlu0 %v289_v8  ;;  %vm207_vm3 = vcmask 261120   ;;  %s290_s15 = smov [#allocation4]   ;;  %s243_s8 = sshll.u32 %s545_s9, 4  ;;  %s244_s8 = int_to_ptr.hbm [resolvable:$true] %s243_s8 }
  0x16   :  { %89 = vmatpush.msra.mxu0 %v50_v24  ;;  %v64_v33 = vld [vmem:[%s537_s1 + $0xa0] sm:$0xff]  ;;  %145 = vmatpush.msra.mxu2 %v132_v28  ;;  %v130_v34 = vld [vmem:[%s539_s3 + $0x48] sm:$0xff]  ;;  %v47_v35 = vld [vmem:[%s537_s1 + $0x18] sm:$0xff]  ;;  %s241_s16 = sshll.u32 %s290_s15, 4  ;;  %vm234_vm4 = vcmask 57344   ;;  %s242_s16 = int_to_ptr.vmem [resolvable:$true] %s241_s16 }
  0x17   :  { %109 = vmatpush.msra.mxu1 %v66_v26  ;;  %v63_v36 = vld [vmem:[%s537_s1 + $0x98] sm:$0xff]  ;;  %v129_v37 = vld [vmem:[%s539_s3 + $0x40] sm:$0xff]  ;;  %v46_v38 = vld [vmem:[%s537_s1 + $0x10] sm:$0xff] }
  0x18   :  { %90 = vmatpush.msra.mxu0 %v49_v29  ;;  %146 = vmatpush.msra.mxu2 %v131_v31  ;;  %v62_v39 = vld [vmem:[%s537_s1 + $0x90] sm:$0xff]  ;;  %v128_v40 = vld [vmem:[%s539_s3 + $0x38] sm:$0xff]  ;;  %v45_v41 = vld [vmem:[%s537_s1 + $0x8] sm:$0xff] }
  0x19   :  { %110 = vmatpush.msra.mxu1 %v65_v30  ;;  %v61_v42 = vld [vmem:[%s537_s1 + $0x88] sm:$0xff]  ;;  %v127_v43 = vld [vmem:[%s539_s3 + $0x30] sm:$0xff]  ;;  %v44_v44 = vld [vmem:[%s537_s1] sm:$0xff] }
  0x1a   :  { %91 = vmatpush.msra.mxu0 %v48_v32  ;;  %147 = vmatpush.msra.mxu2 %v130_v34  ;;  %v60_v45 = vld [vmem:[%s537_s1 + $0x80] sm:$0xff]  ;;  %v43_v46 = vld [vmem:[#allocation2 + $0x8] sm:$0xff]  ;;  %v124_v49 = vld [vmem:[%s539_s3 + $0x18] sm:$0xff] }
  0x1b   :  { %111 = vmatpush.msra.mxu1 %v64_v33  ;;  %v126_v47 = vld [vmem:[%s539_s3 + $0x28] sm:$0xff]  ;;  %v125_v48 = vld [vmem:[%s539_s3 + $0x20] sm:$0xff]  ;;  %v123_v50 = vld [vmem:[%s539_s3 + $0x10] sm:$0xff] }
  0x1c   :  { %92 = vmatpush.msra.mxu0 %v47_v35  ;;  %148 = vmatpush.msra.mxu2 %v129_v37  ;;  %v122_v51 = vld [vmem:[%s539_s3 + $0x8] sm:$0xff]  ;;  %v121_v52 = vld [vmem:[%s539_s3] sm:$0xff]  ;;  %v169_v53 = vld [vmem:[%s541_s5 + $0x38] sm:$0xff] }
  0x1d   :  { %112 = vmatpush.msra.mxu1 %v63_v36  ;;  %v168_v54 = vld [vmem:[%s541_s5 + $0x30] sm:$0xff]  ;;  %186 = vmatpush.msra.mxu3 %v169_v53  ;;  %v167_v55 = vld [vmem:[%s541_s5 + $0x28] sm:$0xff]  ;;  %v166_v56 = vld [vmem:[%s541_s5 + $0x20] sm:$0xff] }
  0x1e   :  { %93 = vmatpush.msra.mxu0 %v46_v38  ;;  %149 = vmatpush.msra.mxu2 %v128_v40  ;;  %v165_v57 = vld [vmem:[%s541_s5 + $0x18] sm:$0xff]  ;;  %v259_v58 = vld [vmem:[%s538_s2] ss:$0 sm:$0xff]  ;;  %v164_v0 = vld [vmem:[%s541_s5 + $0x10] sm:$0xff] }
  0x1f   :  { %113 = vmatpush.msra.mxu1 %v62_v39  ;;  %187 = vmatpush.msra.mxu3 %v168_v54  ;;  %v163_v1 = vld [vmem:[%s541_s5 + $0x8] sm:$0xff]  ;;  %v162_v2 = vld [vmem:[%s541_s5] sm:$0xff]  ;;  %v200_v7 = vld [vmem:[#allocation3] sm:$0x1] }
  0x20   :  { %94 = vmatpush.msra.mxu0 %v45_v41  ;;  %150 = vmatpush.msra.mxu2 %v127_v43  ;;  %v260_v3 = vld [vmem:[%s540_s4] ss:$0 sm:$0xff] }
  0x21   :  { %114 = vmatpush.msra.mxu1 %v61_v42  ;;  %188 = vmatpush.msra.mxu3 %v167_v55  ;;  %v261_v9 = vld [vmem:[%s542_s6] ss:$0 sm:$0xff] }
  0x22   :  { %95 = vmatpush.msra.mxu0 %v44_v44  ;;  %151 = vmatpush.msra.mxu2 %v126_v47  ;;  %v199_v13 = vld [vmem:[%s543_s7] sm:$0x1] }
  0x23   :  { %115 = vmatpush.msra.mxu1 %v60_v45  ;;  %96 = vmatmul.f32.vlgmr.msra.gmra.mxu0 %v389_v15 }
  0x24   :  { %116 = vmatmul.f32.vlgmr.msra.gmra.mxu1 %v43_v46  ;;  %152 = vmatpush.msra.mxu2 %v125_v48 }
  0x25   :  { %189 = vmatpush.msra.mxu3 %v166_v56  ;;  %203 = vperm.xlu0 %258, %v200_v7  }
  0x26   :  { %153 = vmatpush.msra.mxu2 %v124_v49 }
  0x27   :  { %190 = vmatpush.msra.mxu3 %v165_v57 }
  0x28   :  { %154 = vmatpush.msra.mxu2 %v123_v50 }
  0x29   :  { %191 = vmatpush.msra.mxu3 %v164_v0 }
  0x2a   :  { %155 = vmatpush.msra.mxu2 %v122_v51 }
  0x2b   :  { %192 = vmatpush.msra.mxu3 %v163_v1 }
  0x2c   :  { %156 = vmatpush.msra.mxu2 %v121_v52 }
  0x2d   :  { %193 = vmatpush.msra.mxu3 %v162_v2 }
  0x97   :  { %v204_v14 = vpop.permute.xlu0 %203 }
  0x98   :  { %v206_v15 = vperm.slane %v204_v14, 0 }
  0xa0   :  { %v97_v59 = vpop.f32.mrf.mxu0 }
  0xa1   :  { %v117_v60 = vpop.f32.mrf.mxu1  ;;  %v98_v61 = vadd.f32 %v259_v58, %v97_v59 }
  0xa3   :  { %v118_v62 = vadd.f32 %v117_v60, %v98_v61 }
  0xa5   :  { %v120_v63 = vmax.f32 %v118_v62, 0.0 }
  0xa7   :  { %157 = vmatmul.f32.vlgmr.msra.gmra.mxu2 %v120_v63 }
 0x12a   :  { %v158_v4 = vpop.f32.mrf.mxu2 }
 0x12b   :  { %v159_v5 = vadd.f32 %v260_v3, %v158_v4 }
 0x12d   :  { %v161_v6 = vmax.f32 %v159_v5, 0.0 }
 0x12f   :  { %252 = vmatmul.msk.f32.vlgmr.msra.gmra.mxu3 %vm174_vm2, %v161_v6 }
 0x1b2   :  { %v195_v10 = vpop.f32.mrf.mxu3 }
 0x1b3   :  { %v196_v11 = vadd.f32 %v261_v9, %v195_v10 }
 0x1b5   :  { %v198_v12 = vmax.f32 %v196_v11, 0.0 }
 0x1b7   :  { %253 = vmatpush.xpose.msk.msrb.mxu3 %vm207_vm3, %v198_v12 }
 0x1ba   :  { %254 = vmatmul.msk.f32.vlgmr.msrb.gmra.mxu3 %vm207_vm3, %v199_v13 }
 0x23d   :  { %v231_v16 = vpop.f32.mrf.mxu3 }
 0x23e   :  { %v232_v17 = vadd.f32 %v231_v16, %v206_v15 }
 0x240   :  { %235 = vst.msk [vmem:[#allocation4] sm:$0x1] %vm234_vm4, %v232_v17 }
 0x241   :  { %246 = dma.vmem_to_hbm [thread:$0]  %s242_s16, 16, %s244_s8, [#allocation5]  }
 0x242   :  { %286 = dma.done.wait [#allocation5], 16  }
 0x243   :  { %287 = vsyncadd [#allocation5], 4294967280 }
 0x244   :  { %251 = vsyncpa [#allocation5], 1 }

</bundles_post_ra>
